<compile_context>
chip_gen: v7x
topology: tpu7x:2x2x1
jax: 0.10.0
libtpu: 0.0.40
codegen_flags: <defaults>
</compile_context>

<pallas_src>
import jax
import jax.numpy as jnp
from jax.experimental import pallas as pl
from jax.experimental.pallas import tpu as pltpu


def pointconv_kernel(x_ref, w1t_ref, w2t_ref, shifts_ref, o_ref):
    # x_ref: (in_dim, block_n) f32  -- cast to bf16 in-kernel, right before the MXU.
    x = x_ref[...].astype(w1t_ref.dtype)
    # hidden^T = ReLU(W1'^T @ x + shift1)   (BN1 + bias folded into W1'/shift1)
    h = jnp.dot(w1t_ref[...], x, preferred_element_type=jnp.float32)
    h = jnp.maximum(h + shifts_ref[:, 0:1], 0.0)          # f32 epilogue
    # out^T = W2'^T @ hidden^T + shift2     (BN2 + bias folded into W2'/shift2)
    y = jnp.dot(w2t_ref[...], h.astype(w2t_ref.dtype),
                preferred_element_type=jnp.float32)
    o_ref[...] = (y + shifts_ref[:, 1:2]).astype(o_ref.dtype)


def fold_params(params, compute_dtype, eps=1e-5):
    """Fold eval-mode BatchNorm affine + Linear bias into transposed weights / shifts.

    Done once, wrapper-side (layout plumbing, not per-element pre-scaling):
        W1t = (W1 * s1)^T   shape (out_dim, in_dim)
        W2t = (W2 * s2)^T   shape (out_dim, out_dim)
        shifts[:, 0] = s1*b1 + t1 ; shifts[:, 1] = s2*b2 + t2   (f32, column vectors)
    """
    (w1, b1, g1, be1, m1, v1, w2, b2, g2, be2, m2, v2) = params
    s1 = g1 / jnp.sqrt(v1 + eps)
    t1 = be1 - m1 * s1
    s2 = g2 / jnp.sqrt(v2 + eps)
    t2 = be2 - m2 * s2
    w1t = (w1 * s1[None, :]).T.astype(compute_dtype)          # (out_dim, in_dim)
    w2t = (w2 * s2[None, :]).T.astype(compute_dtype)          # (out_dim, out_dim)
    shift1 = s1 * b1 + t1
    shift2 = s2 * b2 + t2
    shifts = jnp.stack([shift1, shift2], axis=1).astype(jnp.float32)  # (out_dim, 2)
    return w1t, w2t, shifts


def _round_up(x, m):
    return ((x + m - 1) // m) * m


def _pick_block_n(n, *, max_block=8192, min_steps=4, align=512):
    """Big tiles (amortize ~0.35us/step) but keep >= min_steps grid steps for v7x's
    two TensorCores + double-buffer overlap; lane dim must be a multiple of 128."""
    bn = min(max_block, _round_up(pl.cdiv(n, min_steps), align))
    bn = max(bn, align)
    bn = min(bn, _round_up(n, 128))   # never bigger than the (lane-padded) array
    return bn


def pointconv_block_cm(x_cm, params, *, block_n=None,
                       compute_dtype=jnp.bfloat16, out_dtype=jnp.bfloat16):
    """Channel-major fused PointConvBlock.

    x_cm: [in_dim, N] float32 (points along lanes).  Returns [out_dim, N] out_dtype.
    """
    in_dim, n = x_cm.shape
    out_dim = params[0].shape[1]
    if block_n is None:
        block_n = _pick_block_n(n)

    w1t, w2t, shifts = fold_params(params, compute_dtype)

    grid = (pl.cdiv(n, block_n),)
    itemsize = jnp.dtype(jnp.float32).itemsize
    cost = pl.CostEstimate(
        flops=2 * n * (in_dim * out_dim + out_dim * out_dim),
        transcendentals=0,
        bytes_accessed=(x_cm.size * itemsize
                        + w1t.size * w1t.dtype.itemsize
                        + w2t.size * w2t.dtype.itemsize
                        + shifts.size * itemsize
                        + n * out_dim * jnp.dtype(out_dtype).itemsize),
    )

    return pl.pallas_call(
        pointconv_kernel,
        out_shape=jax.ShapeDtypeStruct((out_dim, n), out_dtype),
        grid=grid,
        in_specs=[
            pl.BlockSpec((in_dim, block_n), lambda i: (0, i)),   # x tile (lane-dense)
            pl.BlockSpec((out_dim, in_dim), lambda i: (0, 0)),   # W1'^T (resident)
            pl.BlockSpec((out_dim, out_dim), lambda i: (0, 0)),  # W2'^T (resident)
            pl.BlockSpec((out_dim, 2), lambda i: (0, 0)),        # shifts (resident)
        ],
        out_specs=pl.BlockSpec((out_dim, block_n), lambda i: (0, i)),
        compiler_params=pltpu.CompilerParams(
            dimension_semantics=("parallel",)),
        cost_estimate=cost,
    )(x_cm, w1t, w2t, shifts)


def pointconv_block(x, params, **kwargs):
    """PyTorch-layout compatibility wrapper: x [N, in_dim] -> [N, out_dim].

    The transposes here are layout plumbing only; producers that can hand x
    channel-major should call pointconv_block_cm directly to avoid them.
    """
    return pointconv_block_cm(x.T, params, **kwargs).T


def make_params(key, input_dim, output_dim):
    ks = jax.random.split(key, 6)
    # Linear weights stored as [in, out] (transposed vs. PyTorch's [out, in]).
    w1 = jax.random.normal(ks[0], (input_dim, output_dim), jnp.float32) * 0.1
    b1 = jax.random.normal(ks[1], (output_dim,), jnp.float32) * 0.1
    w2 = jax.random.normal(ks[2], (output_dim, output_dim), jnp.float32) * 0.1
    b2 = jax.random.normal(ks[3], (output_dim,), jnp.float32) * 0.1
    # BatchNorm1d params / running stats (deterministic, non-trivial).
    g1 = 1.0 + 0.01 * jnp.arange(output_dim, dtype=jnp.float32)
    be1 = 0.05 * jnp.arange(output_dim, dtype=jnp.float32)
    m1 = jax.random.normal(ks[4], (output_dim,), jnp.float32) * 0.1
    v1 = 1.0 + 0.1 * jnp.abs(jax.random.normal(ks[5], (output_dim,), jnp.float32))
    g2 = 1.0 - 0.005 * jnp.arange(output_dim, dtype=jnp.float32)
    be2 = -0.03 * jnp.arange(output_dim, dtype=jnp.float32)
    m2 = 0.02 * jnp.arange(output_dim, dtype=jnp.float32)
    v2 = 1.0 + 0.05 * jnp.arange(output_dim, dtype=jnp.float32)
    return (w1, b1, g1, be1, m1, v1, w2, b2, g2, be2, m2, v2)


def reference_fp32(x, params):
    """Pure f32 PyTorch-semantics reference (Linear -> BN(eval) -> ReLU -> Linear -> BN)."""
    (w1, b1, g1, be1, m1, v1, w2, b2, g2, be2, m2, v2) = params
    eps = 1e-5
    h = x @ w1 + b1
    h = g1 * (h - m1) / jnp.sqrt(v1 + eps) + be1
    h = jnp.maximum(h, 0.0)
    y = h @ w2 + b2
    y = g2 * (y - m2) / jnp.sqrt(v2 + eps) + be2
    return y


def reference_cast_matched(x, params, compute_dtype):
    """Reference using the same folded/bf16-cast operands as the kernel (f32 accumulation,
    f32 epilogue), so it matches the kernel up to MXU summation order + bf16 output cast."""
    w1t, w2t, shifts = fold_params(params, compute_dtype)
    xq = x.astype(compute_dtype).astype(jnp.float32)
    h = xq @ w1t.T.astype(jnp.float32) + shifts[:, 0]
    h = jnp.maximum(h, 0.0)
    hq = h.astype(compute_dtype).astype(jnp.float32)
    y = hq @ w2t.T.astype(jnp.float32) + shifts[:, 1]
    return y


if __name__ == "__main__":
    key = jax.random.PRNGKey(0)
    kx, kp = jax.random.split(key)

    # Small but representative point cloud: N not a multiple of block_n / 128
    # (exercises the masked ragged last block), 4 grid steps (keeps both v7x TCs busy).
    N, input_dim, output_dim = 2000, 16, 32
    x = jax.random.normal(kx, (N, input_dim), jnp.float32)
    params = make_params(kp, input_dim, output_dim)

    # Preferred lane-dense path: producer hands x channel-major [in_dim, N].
    x_cm = jnp.asarray(x.T)
    out_cm = jax.block_until_ready(pointconv_block_cm(x_cm, params))
    assert out_cm.shape == (output_dim, N) and out_cm.dtype == jnp.bfloat16
    out = out_cm.T.astype(jnp.float32)   # [N, out_dim] for comparison

    # Tight check vs. a reference using the same bf16-cast operands
    # (extra slack only for the bf16 output quantization).
    ref_q = reference_cast_matched(x, params, jnp.bfloat16)
    err_q = float(jnp.max(jnp.abs(out - ref_q)))
    assert jnp.allclose(out, ref_q, atol=2e-2, rtol=2e-2), err_q

    # Loose check vs. the pure-f32 PyTorch-semantics reference (bf16 quantization error).
    ref = reference_fp32(x, params)
    err = float(jnp.max(jnp.abs(out - ref)))
    assert jnp.allclose(out, ref, atol=8e-2, rtol=8e-2), err

    # PyTorch-layout compatibility wrapper gives the identical result.
    out2 = jax.block_until_ready(pointconv_block(x, params))
    assert out2.shape == (N, output_dim)
    assert jnp.allclose(out2.astype(jnp.float32), out, atol=1e-6, rtol=1e-6)

    print("KERNEL_OK")
</pallas_src>

<mosaic_0001>
module attributes {stable_mosaic.version = 11 : i64} {
  func.func @pointconv_kernel(%arg0: i32, %arg1: memref<16x512xf32, #tpu.memory_space<vmem>>, %arg2: memref<32x16xbf16, #tpu.memory_space<vmem>>, %arg3: memref<32x32xbf16, #tpu.memory_space<vmem>>, %arg4: memref<32x2xf32, #tpu.memory_space<vmem>>, %arg5: memref<32x512xbf16, #tpu.memory_space<vmem>>) attributes {dimension_semantics = [#tpu.dimension_semantics<parallel>], iteration_bounds = array<i64: 4>, scalar_prefetch = 0 : i64, scratch_operands = 0 : i64, tpu.core_type = #tpu.core_type<tc>, window_params = [{transform_indices = @transform_0, window_bounds = array<i64: 16, 512>}, {pipeline_mode = #tpu.pipeline_mode<synchronous>, transform_indices = @transform_1, window_bounds = array<i64: 32, 16>}, {pipeline_mode = #tpu.pipeline_mode<synchronous>, transform_indices = @transform_2, window_bounds = array<i64: 32, 32>}, {pipeline_mode = #tpu.pipeline_mode<synchronous>, transform_indices = @transform_3, window_bounds = array<i64: 32, 2>}, {transform_indices = @transform_4, window_bounds = array<i64: 32, 512>}]} {
    %c0 = arith.constant 0 : index
    %c0_0 = arith.constant 0 : index
    %0 = vector.load %arg1[%c0, %c0_0] : memref<16x512xf32, #tpu.memory_space<vmem>>, vector<16x512xf32>
    %1 = arith.truncf %0 : vector<16x512xf32> to vector<16x512xbf16>
    %c0_1 = arith.constant 0 : index
    %c0_2 = arith.constant 0 : index
    %2 = vector.load %arg2[%c0_1, %c0_2] : memref<32x16xbf16, #tpu.memory_space<vmem>>, vector<32x16xbf16>
    %cst = arith.constant dense<0.000000e+00> : vector<32x512xf32>
    %3 = tpu.matmul %2, %1, %cst {dimension_numbers = #tpu.dot_dimension_numbers<[1], [0], [0], [1], [0, 0, 1, 1], [], []>} : vector<32x16xbf16>, vector<16x512xbf16>, vector<32x512xf32> -> vector<32x512xf32>
    %c0_3 = arith.constant 0 : index
    %c0_4 = arith.constant 0 : index
    %4 = vector.load %arg4[%c0_3, %c0_4] : memref<32x2xf32, #tpu.memory_space<vmem>>, vector<32x1xf32>
    %5 = vector.broadcast %4 : vector<32x1xf32> to vector<32x512xf32>
    %6 = arith.addf %3, %5 : vector<32x512xf32>
    %cst_5 = arith.constant 0.000000e+00 : f32
    %7 = vector.broadcast %cst_5 : f32 to vector<32x512xf32>
    %8 = arith.maximumf %6, %7 : vector<32x512xf32>
    %c0_6 = arith.constant 0 : index
    %c0_7 = arith.constant 0 : index
    %9 = vector.load %arg3[%c0_6, %c0_7] : memref<32x32xbf16, #tpu.memory_space<vmem>>, vector<32x32xbf16>
    %10 = arith.truncf %8 : vector<32x512xf32> to vector<32x512xbf16>
    %cst_8 = arith.constant dense<0.000000e+00> : vector<32x512xf32>
    %11 = tpu.matmul %9, %10, %cst_8 {dimension_numbers = #tpu.dot_dimension_numbers<[1], [0], [0], [1], [0, 0, 1, 1], [], []>} : vector<32x32xbf16>, vector<32x512xbf16>, vector<32x512xf32> -> vector<32x512xf32>
    %c0_9 = arith.constant 0 : index
    %c1 = arith.constant 1 : index
    %12 = vector.load %arg4[%c0_9, %c1] : memref<32x2xf32, #tpu.memory_space<vmem>>, vector<32x1xf32>
    %13 = vector.broadcast %12 : vector<32x1xf32> to vector<32x512xf32>
    %14 = arith.addf %11, %13 : vector<32x512xf32>
    %15 = arith.truncf %14 : vector<32x512xf32> to vector<32x512xbf16>
    %c0_10 = arith.constant 0 : index
    %c0_11 = arith.constant 0 : index
    %16 = vector.load %arg5[%c0_10, %c0_11] : memref<32x512xbf16, #tpu.memory_space<vmem>>, vector<32x512xbf16>
    tpu.vector_store %arg5[%c0_10, %c0_11], %15 {strides = array<i32>} : memref<32x512xbf16, #tpu.memory_space<vmem>>, vector<32x512xbf16>,
    return
  }
  func.func @transform_0(%arg0: i32) -> (i32, i32) {
    %c0_i32 = arith.constant 0 : i32
    %c0_i32_0 = arith.constant 0 : i32
    return %c0_i32, %arg0 : i32, i32
  }
  func.func @transform_1(%arg0: i32) -> (i32, i32) {
    %c0_i32 = arith.constant 0 : i32
    %c0_i32_0 = arith.constant 0 : i32
    %c0_i32_1 = arith.constant 0 : i32
    return %c0_i32, %c0_i32_0 : i32, i32
  }
  func.func @transform_2(%arg0: i32) -> (i32, i32) {
    %c0_i32 = arith.constant 0 : i32
    %c0_i32_0 = arith.constant 0 : i32
    %c0_i32_1 = arith.constant 0 : i32
    return %c0_i32, %c0_i32_0 : i32, i32
  }
  func.func @transform_3(%arg0: i32) -> (i32, i32) {
    %c0_i32 = arith.constant 0 : i32
    %c0_i32_0 = arith.constant 0 : i32
    %c0_i32_1 = arith.constant 0 : i32
    return %c0_i32, %c0_i32_0 : i32, i32
  }
  func.func @transform_4(%arg0: i32) -> (i32, i32) {
    %c0_i32 = arith.constant 0 : i32
    %c0_i32_0 = arith.constant 0 : i32
    return %c0_i32, %arg0 : i32, i32
  }
}

</mosaic_0001>

<bundles_post_ra>
// kernel: tpu_custom_call.1
= control target key start
LH: loop header
LB: loop body
LE: loop exit
PB: predicated region body
PF: predicated region fallthrough
CT: control target
= control target key end

     0   :  { %9 = vsyncpa [#allocation3], 0  ;;  %s1146_s0 = inlined_call_operand.hbm [shape: f32[16,2000], index: 0, kind: input, shape index: {}]   ;;  %s1147_s1 = inlined_call_operand.vmem [shape: bf16[32,16], index: 1, kind: input, shape index: {}]   ;;  %s1148_s2 = inlined_call_operand.vmem [shape: bf16[32,32], index: 2, kind: input, shape index: {}]   ;;  %s1149_s3 = inlined_call_operand.vmem [shape: f32[32,2], index: 3, kind: input, shape index: {}]   ;;  %s1150_s4 = inlined_call_operand.hbm [shape: bf16[32,2000], index: 4, kind: output, shape index: {}]  }
   0x1   :  { %11 = vsyncpa [#allocation3 + $0x1], 0 }
   0x2   :  { %12 = vsyncpa [#allocation4], 0 }
   0x3   :  { %14 = vsyncpa [#allocation4 + $0x1], 0  ;;  %s931_s15 = smov 0   ;;  %s933_s16 = smov 0  }
   0x4   :  { %s935_s17 = smov 0   ;;  %s937_s18 = smov 0  }
   0x5 LB: > { %s952_s19 = sadd.s32 4294967295, %s894_s18   ;;  %s692_s20 = sadd.s32 4294967294, %s894_s18   ;;  %s894_s18 = sphi %s937_s18, %s1163_s18   ;;  %s890_s17 = sphi %s935_s17, %s1162_s17   ;;  %s886_s16 = sphi %s933_s16, %s1161_s16   ;;  %s882_s15 = sphi %s931_s15, %s1160_s15  }
   0x6   : > { %s956_s21 = sadd.s32 1, %s894_s18   ;;  %s27_s22 = sadd.s32 1, %s890_s17 }
   0x7   : > { %s24_s23 = ssub.s32 %s894_s18, %s956_s21  ;;  %p34_p0 = scmp.ne.s32.totalorder %s890_s17, %s886_s16 }
   0x8   : > { %p25_p1 = scmp.eq.s32.totalorder %s24_s23, 0  ;;  %p35_p2 = scmp.eq.s32.totalorder %s894_s18, 0 }
   0x9   : > { %p40_p3 = scmp.ne.s32.totalorder %s886_s16, %s882_s15  ;;  %p41_p4 = scmp.eq.s32.totalorder %s952_s19, 0 }
   0xa   : > { %s968_s24 = scalar_select %p25_p1, %s890_s17, %s27_s22  }
   0xb   : > { %p970_p5 = por %p35_p2, %p34_p0  ;;  %p974_p6 = por %p41_p4, %p40_p3 }
   0xc   : > { %p127_p7 = scmp.eq.s32.totalorder %s952_s19, 3  ;;  %p133_p8 = scmp.eq.s32.totalorder %s692_s20, 3 }
   0xd   : > { %p748_p9 = scmp.lt.s32.totalorder %s894_s18, 4  ;;  %s162_s29 = sand.u32 1, %s890_s17  }
   0xe   : > { %p980_p10 = por %p127_p7, %p34_p0  ;;  %p984_p11 = por %p133_p8, %p40_p3 }
   0xf   : > { %s726_s30 = sshll.u32 %s894_s18, 9  ;;  %s695_s5 = sshll.u32 %s162_s29, 6 }
  0x10   : > { %s1154_s27 = scalar_select %p980_p10, 1, 0 }
  0x11   : > { %s1155_s28 = scalar_select %p984_p11, 1, 0 }
  0x12   : > { %s993_s8 = scalar_lea.hbm %s1146_s0, %s726_s30  ;;  %s166_s9 = scalar_lea.vmem [#allocation2], %s695_s5 }
  0x13   : > { %s173_s10 = sshll.u32 %s166_s9, 4  ;;  %p997_p12 = pnand %p748_p9, %p970_p5  ;;  %s1001_s10 = int_to_ptr.vmem [resolvable:$true] %s173_s10 }
  0x14   : > { %s1004_s12 = scalar_lea.sflag [#allocation3], %s162_s29  ;;  %s798_s13 = scalar_lea.hbm %s993_s8, 1024 }
  0x15   : > { %p799_p0 = scmp.ne.s32.totalorder %s993_s8, %s798_s13  ;;  %p800_p1 = pneg %p997_p12 }
  0x16   : > { %s803_s22 = scalar_lea.hbm %s1146_s0, 4096  ;;  %p804_p4 = scmp.lt.u32.totalorder %s993_s8, %s1146_s0 }
  0x17   : > { %p801_p2 = pnand %p800_p1, %p799_p0  ;;  %p805_p5 = scmp.lt.u32.totalorder %s803_s22, %s798_s13 }
  0x18   : > { %p807_p8 = scmp.lt.u32.totalorder %s798_s13, %s993_s8 }
  0x19   : > { %p802_p3 = pneg %p801_p2  ;;  %p806_p7 = por %p805_p5, %p804_p4 }
  0x1b   : > { %p808_p9 = por %p807_p8, %p806_p7 }
  0x1d   : > { %p809_p13 = pnand %p808_p9, %p802_p3 }
  0x1f   : > { %812 = shalt.err (!%p809_p13)
}
  0x20   : > { %s813_s29 = scalar_lea.vmem %s1001_s10, 1024  ;;  %s896_s30 = smov [#allocation2]  }
  0x21   : > { %p814_p0 = scmp.ne.s32.totalorder %s1001_s10, %s813_s29  ;;  %s818_s5 = sshll.u32 %s896_s30, 4  ;;  %s819_s5 = int_to_ptr.vmem [resolvable:$false] %s818_s5 }
  0x22   : > { %s820_s6 = scalar_lea.vmem %s819_s5, 2048  ;;  %p821_p10 = scmp.lt.s32.totalorder %s1001_s10, %s819_s5 }
  0x23   : > { %p816_p2 = pnand %p814_p0, %p800_p1  ;;  %p822_p4 = scmp.lt.s32.totalorder %s820_s6, %s813_s29 }
  0x25   : > { %p817_p11 = pneg %p816_p2  ;;  %p823_p5 = por %p822_p4, %p821_p10 }
  0x27   : > { %p824_p7 = pnand %p823_p5, %p817_p11 }
  0x29   : > { %827 = shalt.err (!%p824_p7)
}
  0x2a   : > { %s897_s7 = smov 2048   ;;  %s898_s9 = smov 512  }
  0x2b   : > { %s899_s13 = smov 32   ;;  %p181_p13 = scmp.lt.s32.totalorder %s894_s18, 5 }
  0x2c   : > { %743 = dma.hbm_to_vmem [thread:$0]  (!%p997_p12), %s993_s8, 1024, %s1001_s10, %s1004_s12, %s897_s7, %s898_s9, %s899_s13  }
  0x2d   : > { %p1157_p1 = scmp.ge.s32.totalorder %s894_s18, 1 }
  0x2f   : > { %p182_p3 = pnand %p1157_p1, %p181_p13 }
  0x30   : > { %s1036_s14 = sand.u32 (!%p182_p3), 1, %s886_s16  }
  0x31   : > { %185 = sbr.rel (%p182_p3) target bundleno = 542 (0x21e), region = 36  ;;  %s699_s20 = sshll.u32 (!%p182_p3), %s1036_s14, 6 }
  0x32   : > { %s188_s22 = scalar_lea.sflag (!%p182_p3), [#allocation3], %s1036_s14  ;;  %s191_s23 = scalar_lea.vmem (!%p182_p3), [#allocation2], %s699_s20 }
  0x38   : > { %873 = dma.done.wait (%p974_p6), %s188_s22, 1024  }
  0x39   : > { %875 = vsyncadd (%p974_p6), %s188_s22, 4294966272  ;;  %v900_v0 = vmov 0   ;;  %v220_v1 = vld [vmem:[%s191_s23 + $0x8] sm:$0xff]  ;;  %v222_v3 = vld [vmem:[%s191_s23 + $0x18] sm:$0xff]  ;;  %vm269_vm0 = vcmask 130048   ;;  %v901_v19 = vmov 1  }
  0x3a   : > { %308 = vmatprep.mubr.bf16.mxu0 %v900_v0  ;;  %361 = vmatprep.mubr.bf16.mxu1 %v900_v0  ;;  %v224_v2 = vld [vmem:[%s191_s23 + $0x28] sm:$0xff]  ;;  %v226_v5 = vld [vmem:[%s191_s23 + $0x38] sm:$0xff]  ;;  %v219_v6 = vld [vmem:[%s191_s23] sm:$0xff]  ;;  %vm436_vm1 = vcmask 261120   ;;  %s1086_s8 = scalar_lea.vmem [#allocation5], %s699_s20  ;;  %s735_s10 = sshll.u32 %s952_s19, 8 }
  0x3b   : > { %790 = vset.pattern.permute.xlu0 %v900_v0  ;;  %791 = vset.pattern.permute.xlu1 %v900_v0  ;;  %v228_v4 = vpack.c.bf16 %v224_v2, %v220_v1  ;;  %v223_v7 = vld [vmem:[%s191_s23 + $0x20] sm:$0xff]  ;;  %v230_v8 = vpack.c.bf16 %v226_v5, %v222_v3  ;;  %v221_v10 = vld [vmem:[%s191_s23 + $0x10] sm:$0xff]  ;;  %v236_v15 = vld [vmem:[%s1149_s3 + $0x8] sm:$0xff]  ;;  %s619_s20 = sshll.u32 %s1086_s8, 4  ;;  %s1100_s25 = scalar_lea.hbm %s1150_s4, %s735_s10  ;;  %s1094_s20 = int_to_ptr.vmem [resolvable:$true] %s619_s20 }
  0x3c   : > { %v227_v9 = vpack.c.bf16 %v223_v7, %v219_v6  ;;  %v225_v11 = vld [vmem:[%s191_s23 + $0x30] sm:$0xff]  ;;  %v794_v13 = vld [vmem:[%s1147_s1] sm:$0xff]   ;;  %v238_v17 = vld [vmem:[%s1149_s3 + $0x18] sm:$0xff]  ;;  %s606_s19 = scalar_lea.sflag [#allocation4], %s1036_s14  ;;  %s828_s29 = scalar_lea.vmem %s1094_s20, 1024 }
  0x3d   : > { %276 = vmatprep.subr.bf16.mxu0 %v228_v4  ;;  %v229_v12 = vpack.c.bf16 %v225_v11, %v221_v10  ;;  %329 = vmatprep.subr.bf16.mxu1 %v230_v8  ;;  %v235_v14 = vld [vmem:[%s1149_s3] sm:$0xff]  ;;  %v237_v16 = vld [vmem:[%s1149_s3 + $0x10] sm:$0xff]  ;;  %v795_v18 = vld [vmem:[%s1147_s1 + $0x8] sm:$0xff]   ;;  %p829_p6 = scmp.ne.s32.totalorder %s1094_s20, %s828_s29  ;;  %p1158_p10 = scmp.ne.s32.totalorder %s1154_s27, 0 }
  0x3e   : > { %277 = vmatpush1.bf16.msra.mxu0 %v227_v9  ;;  %241 = vperm.xlu0 %790, %v235_v14   ;;  %s902_s30 = smov [#allocation5]  }
  0x3f   : > { %330 = vmatpush1.bf16.msra.mxu1 %v229_v12  ;;  %251 = vperm.xlu1 %791, %v237_v16   ;;  %p830_p11 = pnand %p829_p6, %p1158_p10  ;;  %s832_s5 = sshll.u32 %s902_s30, 4  ;;  %s833_s5 = int_to_ptr.vmem [resolvable:$false] %s832_s5 }
  0x40   : > { %s834_s6 = scalar_lea.vmem %s833_s5, 2048  ;;  %p835_p8 = scmp.lt.s32.totalorder %s1094_s20, %s833_s5 }
  0x41   : > { %703 = vmatmul.mubr.msk.bf16.vlgmr.msra.gmra.mrb[0].mxu0 %vm269_vm0, %v794_v13  ;;  %p831_p12 = pneg %p830_p11  ;;  %p836_p9 = scmp.lt.s32.totalorder %s834_s6, %s828_s29 }
  0x42   : > { %705 = vmatmul.mubr.msk.bf16.vlgmr.msra.gmra.mrb[0].mxu1 %vm269_vm0, %v794_v13  ;;  %318 = vmatprep.mubr.bf16.mxu0 %v900_v0 }
  0x43   : > { %371 = vmatprep.mubr.bf16.mxu1 %v900_v0  ;;  %246 = vperm.xlu0 %790, %v236_v15   ;;  %p837_p0 = por %p836_p9, %p835_p8 }
  0x44   : > { %256 = vperm.xlu1 %791, %v238_v17  }
  0x45   : > { %p838_p2 = pnand %p837_p0, %p831_p12 }
  0x47   : > { %792 = vset.pattern.permute.xlu0 %v901_v19 }
  0x48   : > { %793 = vset.pattern.permute.xlu1 %v901_v19  ;;  %411 = vperm.xlu0 %792, %v235_v14  }
  0x49   : > { %704 = vmatmul.mubr.msk.bf16.gmra.mrb[4].mxu0 %vm269_vm0, %v795_v18  ;;  %415 = vperm.xlu1 %793, %v236_v15  }
  0x4a   : > { %706 = vmatmul.mubr.msk.bf16.gmra.mrb[4].mxu1 %vm269_vm0, %v795_v18  ;;  %475 = vmatprep.mubr.bf16.mxu0 %v900_v0  ;;  %v797_v18 = vld [vmem:[%s1148_s2 + $0x8] sm:$0xff]  }
  0x4b   : > { %528 = vmatprep.mubr.bf16.mxu1 %v900_v0 }
  0x4c   : > { %423 = vperm.xlu0 %792, %v238_v17   ;;  %v796_v17 = vld [vmem:[%s1148_s2] sm:$0xff]  }
  0x4d   : > { %419 = vperm.xlu1 %793, %v237_v16  }
  0xbd   : > { %v242_v20 = vpop.permute.xlu0 %241 }
  0xbe   : > { %v252_v21 = vpop.permute.xlu1 %251 }
  0xc2   : > { %v247_v22 = vpop.permute.xlu0 %246 }
  0xc3   : > { %v257_v50 = vpop.permute.xlu1 %256 }
  0xc7   : > { %v412_v19 = vpop.permute.xlu0 %411 }
 0x114   : > { %v310_v23 = vpop.f32.mrb[0].mxu0 }
 0x115   : > { %v311_v24 = vadd.f32 %v310_v23, %v242_v20  ;;  %v363_v25 = vpop.f32.mrb[0].mxu1  ;;  %v312_v26 = vpop.f32.mrb[1].mxu0 }
 0x116   : > { %v364_v27 = vadd.f32 %v363_v25, %v242_v20  ;;  %v313_v28 = vadd.f32 %v312_v26, %v242_v20  ;;  %v365_v29 = vpop.f32.mrb[1].mxu1  ;;  %v314_v30 = vpop.f32.mrb[2].mxu0 }
 0x117   : > { %v366_v31 = vadd.f32 %v365_v29, %v242_v20  ;;  %v315_v32 = vadd.f32 %v314_v30, %v247_v22  ;;  %v367_v33 = vpop.f32.mrb[2].mxu1  ;;  %v316_v34 = vpop.f32.mrb[3].mxu0  ;;  %v382_v38 = vmax.f32 %v311_v24, 0.0 }
 0x118   : > { %v368_v35 = vadd.f32 %v367_v33, %v247_v22  ;;  %v317_v36 = vadd.f32 %v316_v34, %v247_v22  ;;  %v369_v37 = vpop.f32.mrb[3].mxu1  ;;  %v384_v41 = vmax.f32 %v364_v27, 0.0  ;;  %v383_v42 = vmax.f32 %v313_v28, 0.0 }
 0x119   : > { %v386_v39 = vmax.f32 %v315_v32, 0.0  ;;  %v370_v40 = vadd.f32 %v369_v37, %v247_v22  ;;  %v385_v45 = vmax.f32 %v366_v31, 0.0 }
 0x11a   : > { %v388_v43 = vmax.f32 %v368_v35, 0.0  ;;  %v387_v44 = vmax.f32 %v317_v36, 0.0 }
 0x11b   : > { %v402_v46 = vpack.c.bf16 %v386_v39, %v382_v38  ;;  %v389_v47 = vmax.f32 %v370_v40, 0.0 }
 0x11c   : > { %v404_v48 = vpack.c.bf16 %v388_v43, %v384_v41  ;;  %v403_v49 = vpack.c.bf16 %v387_v44, %v383_v42  ;;  %v320_v51 = vpop.f32.mrb[4].mxu0  ;;  %v424_v42 = vpop.permute.xlu0 %423 }
 0x11d   : > { %v405_v52 = vpack.c.bf16 %v389_v47, %v385_v45  ;;  %v321_v53 = vadd.f32 %v320_v51, %v252_v21  ;;  %v373_v54 = vpop.f32.mrb[4].mxu1  ;;  %v322_v55 = vpop.f32.mrb[5].mxu0 }
 0x11e   : > { %v374_v56 = vadd.f32 %v373_v54, %v252_v21  ;;  %v323_v57 = vadd.f32 %v322_v55, %v252_v21  ;;  %v375_v58 = vpop.f32.mrb[5].mxu1  ;;  %v324_v59 = vpop.f32.mrb[6].mxu0  ;;  %443 = vmatprep.subr.bf16.mxu0 %v403_v49 }
 0x11f   : > { %v376_v60 = vadd.f32 %v375_v58, %v252_v21  ;;  %v325_v61 = vadd.f32 %v324_v59, %v257_v50  ;;  %v377_v62 = vpop.f32.mrb[6].mxu1  ;;  %496 = vmatprep.subr.bf16.mxu1 %v405_v52  ;;  %v326_v63 = vpop.f32.mrb[7].mxu0  ;;  %444 = vmatpush1.bf16.msra.mxu0 %v402_v46  ;;  %v390_v4 = vmax.f32 %v321_v53, 0.0 }
 0x120   : > { %v378_v1 = vadd.f32 %v377_v62, %v257_v50  ;;  %v327_v2 = vadd.f32 %v326_v63, %v257_v50  ;;  %v379_v3 = vpop.f32.mrb[7].mxu1  ;;  %497 = vmatpush1.bf16.msra.mxu1 %v404_v48  ;;  %v392_v7 = vmax.f32 %v374_v56, 0.0  ;;  %v391_v8 = vmax.f32 %v323_v57, 0.0  ;;  %v416_v21 = vpop.permute.xlu1 %415 }
 0x121   : > { %v394_v5 = vmax.f32 %v325_v61, 0.0  ;;  %v380_v6 = vadd.f32 %v379_v3, %v257_v50  ;;  %v393_v11 = vmax.f32 %v376_v60, 0.0 }
 0x122   : > { %v396_v9 = vmax.f32 %v378_v1, 0.0  ;;  %v395_v10 = vmax.f32 %v327_v2, 0.0 }
 0x123   : > { %v406_v12 = vpack.c.bf16 %v394_v5, %v390_v4  ;;  %v397_v13 = vmax.f32 %v380_v6, 0.0 }
 0x124   : > { %v408_v14 = vpack.c.bf16 %v396_v9, %v392_v7  ;;  %v407_v15 = vpack.c.bf16 %v395_v10, %v391_v8  ;;  %v420_v39 = vpop.permute.xlu1 %419 }
 0x125   : > { %v409_v16 = vpack.c.bf16 %v397_v13, %v393_v11 }
 0x126   : > { %445 = vmatprep.subr.bf16.mxu0 %v407_v15 }
 0x127   : > { %498 = vmatprep.subr.bf16.mxu1 %v409_v16  ;;  %446 = vmatpush1.bf16.msra.mxu0 %v406_v12 }
 0x128   : > { %499 = vmatpush1.bf16.msra.mxu1 %v408_v14 }
 0x12a   : > { %709 = vmatmul.mubr.msk.bf16.vlgmr.msra.gmra.mrb[8].mxu0 %vm436_vm1, %v796_v17 }
 0x12b   : > { %711 = vmatmul.mubr.msk.bf16.vlgmr.msra.gmra.mrb[8].mxu1 %vm436_vm1, %v796_v17  ;;  %485 = vmatprep.mubr.bf16.mxu0 %v900_v0 }
 0x12c   : > { %538 = vmatprep.mubr.bf16.mxu1 %v900_v0 }
 0x132   : > { %710 = vmatmul.mubr.msk.bf16.gmra.mrb[12].mxu0 %vm436_vm1, %v797_v18 }
 0x133   : > { %712 = vmatmul.mubr.msk.bf16.gmra.mrb[12].mxu1 %vm436_vm1, %v797_v18 }
 0x1fd   : > { %v477_v20 = vpop.f32.mrb[8].mxu0 }
 0x1fe   : > { %v530_v22 = vpop.f32.mrb[8].mxu1  ;;  %v479_v23 = vpop.f32.mrb[9].mxu0  ;;  %v478_v24 = vadd.f32 %v477_v20, %v412_v19 }
 0x1ff   : > { %v532_v25 = vpop.f32.mrb[9].mxu1  ;;  %v481_v26 = vpop.f32.mrb[10].mxu0  ;;  %v480_v27 = vadd.f32 %v479_v23, %v412_v19  ;;  %v531_v28 = vadd.f32 %v530_v22, %v412_v19 }
 0x200   : > { %v534_v29 = vpop.f32.mrb[10].mxu1  ;;  %v533_v30 = vadd.f32 %v532_v25, %v412_v19  ;;  %v482_v0 = vadd.f32 %v481_v26, %v416_v21  ;;  %v483_v31 = vpop.f32.mrb[11].mxu0 }
 0x201   : > { %v727_v32 = vpack.c.bf16 %v480_v27, %v478_v24  ;;  %v484_v33 = vadd.f32 %v483_v31, %v416_v21  ;;  %v535_v34 = vadd.f32 %v534_v29, %v416_v21  ;;  %v536_v35 = vpop.f32.mrb[11].mxu1 }
 0x202   : > { %v728_v36 = vpack.c.bf16 %v533_v30, %v531_v28  ;;  %v537_v37 = vadd.f32 %v536_v35, %v416_v21 }
 0x203   : > { %597 = vst [vmem:[%s1086_s8] sm:$0xff] %v727_v32  ;;  %v729_v38 = vpack.c.bf16 %v484_v33, %v482_v0 }
 0x204   : > { %598 = vst [vmem:[%s1086_s8 + $0x8] sm:$0xff] %v728_v36  ;;  %v730_v40 = vpack.c.bf16 %v537_v37, %v535_v34 }
 0x205   : > { %599 = vst [vmem:[%s1086_s8 + $0x10] sm:$0xff] %v729_v38  ;;  %v487_v41 = vpop.f32.mrb[12].mxu0 }
 0x206   : > { %600 = vst [vmem:[%s1086_s8 + $0x18] sm:$0xff] %v730_v40  ;;  %v540_v43 = vpop.f32.mrb[12].mxu1  ;;  %v489_v44 = vpop.f32.mrb[13].mxu0  ;;  %v488_v45 = vadd.f32 %v487_v41, %v420_v39 }
 0x207   : > { %v542_v46 = vpop.f32.mrb[13].mxu1  ;;  %v491_v47 = vpop.f32.mrb[14].mxu0  ;;  %v490_v48 = vadd.f32 %v489_v44, %v420_v39  ;;  %v541_v49 = vadd.f32 %v540_v43, %v420_v39 }
 0x208   : > { %v544_v50 = vpop.f32.mrb[14].mxu1  ;;  %v543_v51 = vadd.f32 %v542_v46, %v420_v39  ;;  %v492_v52 = vadd.f32 %v491_v47, %v424_v42  ;;  %v493_v53 = vpop.f32.mrb[15].mxu0 }
 0x209   : > { %v731_v54 = vpack.c.bf16 %v490_v48, %v488_v45  ;;  %v545_v55 = vadd.f32 %v544_v50, %v424_v42  ;;  %v494_v56 = vadd.f32 %v493_v53, %v424_v42  ;;  %v546_v57 = vpop.f32.mrb[15].mxu1 }
 0x20a   : > { %v732_v58 = vpack.c.bf16 %v543_v51, %v541_v49  ;;  %v547_v59 = vadd.f32 %v546_v57, %v424_v42 }
 0x20b   : > { %601 = vst [vmem:[%s1086_s8 + $0x20] sm:$0xff] %v731_v54  ;;  %v733_v60 = vpack.c.bf16 %v494_v56, %v492_v52 }
 0x20c   : > { %602 = vst [vmem:[%s1086_s8 + $0x28] sm:$0xff] %v732_v58  ;;  %v734_v61 = vpack.c.bf16 %v547_v59, %v545_v55 }
 0x20d   : > { %603 = vst [vmem:[%s1086_s8 + $0x30] sm:$0xff] %v733_v60 }
 0x20e   : > { %604 = vst [vmem:[%s1086_s8 + $0x38] sm:$0xff] %v734_v61 }
 0x20f   : > { %841 = shalt.err (!%p838_p2)
}
 0x210   : > { %s842_s7 = scalar_lea.hbm %s1100_s25, 1024  ;;  %s846_s22 = scalar_lea.hbm %s1150_s4, 4096 }
 0x211   : > { %p843_p4 = scmp.ne.s32.totalorder %s1100_s25, %s842_s7  ;;  %p847_p13 = scmp.lt.u32.totalorder %s1100_s25, %s1150_s4 }
 0x212   : > { %p848_p1 = scmp.lt.u32.totalorder %s846_s22, %s842_s7  ;;  %p850_p6 = scmp.lt.u32.totalorder %s842_s7, %s1100_s25 }
 0x213   : > { %p844_p5 = pnand %p843_p4, %p1158_p10 }
 0x214   : > { %p849_p3 = por %p848_p1, %p847_p13 }
 0x215   : > { %p845_p7 = pneg %p844_p5 }
 0x216   : > { %p851_p11 = por %p850_p6, %p849_p3 }
 0x218   : > { %p852_p12 = pnand %p851_p11, %p845_p7 }
 0x21a   : > { %855 = shalt.err (!%p852_p12)
}
 0x21b   : > { %s903_s8 = smov 256   ;;  %s904_s10 = smov 1024  }
 0x21c   : > { %s905_s11 = smov 16  }
 0x21d   : > { %738 = dma.vmem_to_hbm [thread:$0]  (%p1158_p10), %s1094_s20, 1024, %s1100_s25, %s606_s19, %s903_s8, %s904_s10, %s905_s11  }
 0x21e PF: > { %p749_p8 = scmp.ge.s32.totalorder %s894_s18, 2  ;;  %s634_s12 = sand.u32 1, %s882_s15  }
 0x21f   : > { %p1159_p9 = scmp.ne.s32.totalorder %s1155_s28, 0  ;;  %s635_s29 = scalar_lea.sflag [#allocation4], %s634_s12 }
 0x221   : > { %p745_p0 = pnand %p749_p8, %p1159_p9 }
 0x223   : > { %877 = dma.done.wait (!%p745_p0), %s635_s29, 1024  }
 0x224   : > { %879 = vsyncadd (!%p745_p0), %s635_s29, 4294966272  ;;  %p17_p2 = scmp.ge.s32.totalorder %s956_s21, 6   ;;  %s1160_s15 = smov %s886_s16 }
 0x225   : > { %s1161_s16 = smov %s890_s17  ;;  %s1162_s17 = smov %s968_s24 }
 0x226   : > { %s1163_s18 = smov %s956_s21  ;;  %19 = sbr.rel (!%p17_p2) target bundleno = 5 (0x5), region = 81 }
 0x22d   :  { %640 = vsyncpa [#allocation3], 1 }
 0x22e   :  { %642 = vsyncpa [#allocation3 + $0x1], 1 }
 0x22f   :  { %643 = vsyncpa [#allocation4], 1 }
 0x230   :  { %645 = vsyncpa [#allocation4 + $0x1], 1 }

</bundles_post_ra>
